<compile_context>
chip_gen: v5e
topology: v5e:2x2
jax: 0.10.0
libtpu: 0.0.40
codegen_flags: <defaults>
</compile_context>

<pallas_src>
import numpy as np
import jax
import jax.numpy as jnp
from jax.experimental import pallas as pl
from jax.experimental.pallas import tpu as pltpu


# ---------------------------------------------------------------------------
# Kernel 1: keypoint / descriptor scatter (HW-tiled, per-tile K window,
#           empty-tile fast path).
#   res[d, hw]  = sum_k desc_ext[d, k] * (hw == kp[k])     (MXU matmul)
#   desc        = res[:D]    (bf16 writeback)
#   prob        = res[D]     (ones row folded into the same matmul)
# ---------------------------------------------------------------------------
def _scatter_kernel(counts_ref, kp_ref, desct_ref, prob_ref, desc_ref):
    # counts_ref: SMEM [num_tiles] int32 (scalar-prefetched per-tile kp counts)
    # kp_ref:     VMEM [KW, 1]    int32 (this tile's flat kp indices, -1 = pad)
    # desct_ref:  VMEM [D+1, KW]  bf16  (this tile's descriptors^T; row D = 1s)
    # prob_ref:   VMEM [1, TILE]  f32   (per-tile output block)
    # desc_ref:   VMEM [D, TILE]  bf16  (per-tile output block)
    t = pl.program_id(0)
    tile = prob_ref.shape[1]
    D = desc_ref.shape[0]

    @pl.when(counts_ref[t] > 0)
    def _nonempty():
        base = t * tile
        # Per-tile lane iota + scalar tile offset (no [K, HW] iota).
        lane = jax.lax.broadcasted_iota(jnp.int32, (1, tile), 1) + base
        onehot = (lane == kp_ref[...]).astype(desct_ref.dtype)   # [KW, TILE] 0/1
        # Single MXU matmul; f32 accumulation.  Row D (ones row) is prob.
        res = jnp.dot(desct_ref[...], onehot,
                      preferred_element_type=jnp.float32)        # [D+1, TILE]
        desc_ref[...] = res[:D, :].astype(desc_ref.dtype)
        # Clamp handles hypothetical duplicate keypoint pixels for prob.
        prob_ref[...] = jnp.minimum(res[D:, :], 1.0)

    @pl.when(counts_ref[t] == 0)
    def _empty():
        prob_ref[...] = jnp.zeros_like(prob_ref)
        desc_ref[...] = jnp.zeros_like(desc_ref)


# ---------------------------------------------------------------------------
# Generation-aware VMEM budget / tile sizing.
# ---------------------------------------------------------------------------
def _vmem_budget_bytes():
    """~3/4 of physical per-core VMEM (v5e/v6e 128MiB -> 96MiB, v7x 64MiB -> 48MiB)."""
    cap = 128 * 2 ** 20
    try:
        info = pltpu.get_tpu_info()
        cap = int(getattr(info, 'vmem_capacity_bytes', cap)) or cap
    except Exception:
        pass
    return int(min((cap * 3) // 4, 96 * 2 ** 20))


def _vmem_estimate(tile, D, KW, out_itemsize, op_itemsize):
    io = 2 * tile * (4 + D * out_itemsize)               # double-buffered out blocks
    io += 2 * KW * (4 + (D + 1) * op_itemsize)           # double-buffered in blocks
    tmp = KW * tile * (op_itemsize + 1)                   # onehot + bool match
    tmp += (D + 1) * tile * 4                              # f32 matmul result
    tmp += D * tile * out_itemsize + 2 * tile * 4          # store cast + iota/prob row
    return io + tmp


def _pick_tile(hw, max_tile, fits):
    """Pick (tile, hw_pad).  tile is a multiple of 128 fitting the VMEM budget;
    prefers exact divisors of hw (no padded tail) and an even tile count
    (keeps both v7x TensorCores busy on the 'parallel' grid axis)."""
    cap = max(128, (int(max_tile) // 128) * 128)
    while cap > 128 and not fits(cap):
        cap = max(128, (cap // 2 // 128) * 128)
    if hw <= cap:
        tile = -(-hw // 128) * 128
        return tile, tile
    best = None
    for cand in range(cap, 127, -128):
        if hw % cand == 0:
            if (hw // cand) % 2 == 0:
                return cand, hw
            if best is None:
                best = cand
    if best is not None:
        return best, hw
    ntiles = -(-hw // cap)          # no multiple-of-128 divisor: pad HW up
    return cap, ntiles * cap


def scatter_keypoints(kp_flat, descriptors, H, W, *, tile_hw=16384,
                      matmul_dtype=jnp.bfloat16, desc_dtype=jnp.bfloat16):
    """Returns prob [1,1,H,W] float32 and desc [1,D,H,W] desc_dtype."""
    kp_flat = np.asarray(kp_flat).astype(np.int64)
    desc_np = np.asarray(descriptors, dtype=np.float32)
    K, D = desc_np.shape
    HW = H * W
    mdt = np.dtype(matmul_dtype)
    odt = np.dtype(desc_dtype)
    budget = _vmem_budget_bytes()

    def fits(T, KW):
        return (_vmem_estimate(T, D, KW, odt.itemsize, mdt.itemsize) * 3) // 2 <= budget

    # Tile size <-> per-tile K window (KW) fixed point.
    tile, hw_pad = _pick_tile(HW, tile_hw, lambda T: fits(T, 128))
    while True:
        num_tiles = hw_pad // tile
        tile_ids = kp_flat // tile
        counts = np.bincount(tile_ids, minlength=num_tiles).astype(np.int32)
        max_cnt = int(counts.max()) if K > 0 else 0
        KW = max(128, -(-max_cnt // 128) * 128)
        if fits(tile, KW) or tile <= 128:
            break
        tile, hw_pad = _pick_tile(HW, tile // 2, lambda T: fits(T, KW))

    # Host-side grouping of keypoints/descriptors by HW tile (detector output
    # is host-side anyway).  Sentinel kp = -1 never matches a lane index >= 0.
    order = np.argsort(tile_ids, kind='stable')
    sorted_tiles = tile_ids[order]
    sorted_kp = kp_flat[order]
    starts = np.zeros(num_tiles, np.int64)
    starts[1:] = np.cumsum(counts[:-1])
    pos = np.arange(K, dtype=np.int64) - starts[sorted_tiles]
    kp_grouped = np.full((num_tiles * KW, 1), -1, np.int32)
    kp_grouped[sorted_tiles * KW + pos, 0] = sorted_kp.astype(np.int32)
    desc_grouped = np.zeros((num_tiles, D + 1, KW), np.float32)
    desc_grouped[:, D, :] = 1.0                 # ones row -> prob via the matmul
    desc_grouped[sorted_tiles, :D, pos] = desc_np[order]

    kp_g = jnp.asarray(kp_grouped)
    desc_g = jnp.asarray(desc_grouped, dtype=mdt)
    counts_j = jnp.asarray(counts)

    est = _vmem_estimate(tile, D, KW, odt.itemsize, mdt.itemsize)
    vmem_limit = int(min(budget, max((est * 3) // 2, 16 * 2 ** 20)))

    prob_flat, desc_flat = pl.pallas_call(
        _scatter_kernel,
        out_shape=(jax.ShapeDtypeStruct((1, hw_pad), jnp.float32),
                   jax.ShapeDtypeStruct((D, hw_pad), odt)),
        grid_spec=pltpu.PrefetchScalarGridSpec(
            num_scalar_prefetch=1,
            grid=(num_tiles,),
            in_specs=[
                pl.BlockSpec((KW, 1), lambda t, counts: (t, 0)),
                pl.BlockSpec((None, D + 1, KW), lambda t, counts: (t, 0, 0)),
            ],
            out_specs=(
                pl.BlockSpec((1, tile), lambda t, counts: (0, t)),
                pl.BlockSpec((D, tile), lambda t, counts: (0, t)),
            ),
        ),
        compiler_params=pltpu.CompilerParams(
            dimension_semantics=("parallel",),
            vmem_limit_bytes=vmem_limit),
    )(counts_j, kp_g, desc_g)

    if hw_pad != HW:
        prob_flat = prob_flat[:, :HW]
        desc_flat = desc_flat[:, :HW]
    return prob_flat.reshape(1, 1, H, W), desc_flat.reshape(1, D, H, W)


# ---------------------------------------------------------------------------
# Kernel 2: Gaussian prob smoothing, separable 5-tap x 5-tap, zero-padded
# borders handled in-kernel with pltpu.roll + masks (no wrapper jnp.pad).
# ---------------------------------------------------------------------------
def _make_smooth_kernel(H, W, g1d):
    ksz = len(g1d)
    pad = (ksz - 1) // 2
    w = [float(v) for v in g1d]

    def kern(p_ref, out_ref):
        x = p_ref[...]                                              # (H, W) f32
        # Horizontal (lane axis) pass.
        col = jax.lax.broadcasted_iota(jnp.int32, (H, W), 1)
        hacc = w[pad] * x
        for d in range(1, pad + 1):
            right = jnp.where(col < W - d,
                              pltpu.roll(x, shift=W - d, axis=1), 0.0)
            left = jnp.where(col >= d,
                             pltpu.roll(x, shift=d, axis=1), 0.0)
            hacc = hacc + w[pad + d] * right + w[pad - d] * left
        # Vertical (sublane axis) pass.
        row = jax.lax.broadcasted_iota(jnp.int32, (H, W), 0)
        vacc = w[pad] * hacc
        for d in range(1, pad + 1):
            down = jnp.where(row < H - d,
                             pltpu.roll(hacc, shift=H - d, axis=0), 0.0)
            up = jnp.where(row >= d,
                           pltpu.roll(hacc, shift=d, axis=0), 0.0)
            vacc = vacc + w[pad + d] * down + w[pad - d] * up
        out_ref[...] = vacc

    return kern


def smooth_prob(prob, g1d):
    _, _, H, W = prob.shape
    out = pl.pallas_call(
        _make_smooth_kernel(H, W, g1d),
        out_shape=jax.ShapeDtypeStruct((H, W), jnp.float32),
        grid=(1,),
        in_specs=[pl.BlockSpec((H, W), lambda i: (0, 0))],
        out_specs=pl.BlockSpec((H, W), lambda i: (0, 0)),
    )(prob[0, 0].astype(jnp.float32))
    return out.reshape(1, 1, H, W)


# ---------------------------------------------------------------------------
# Deterministic parameter init (mirrors utils.get_gaussian_filter(ksize)).
# TODO(synk): exact sigma used by utils.get_gaussian_filter is unknown; using
#             OpenCV's default sigma(ksize) with a sum-normalized separable kernel.
# ---------------------------------------------------------------------------
def get_gaussian_filter_weights_1d(ksize, sigma=None):
    if sigma is None:
        sigma = 0.3 * ((ksize - 1) * 0.5 - 1) + 0.8
    ax = np.arange(ksize, dtype=np.float64) - (ksize - 1) / 2.0
    g = np.exp(-(ax ** 2) / (2.0 * sigma ** 2))
    return (g / g.sum()).astype(np.float32)


# ---------------------------------------------------------------------------
# ClassicDetectors (forward semantics)
# ---------------------------------------------------------------------------
class ClassicDetectorsPallas:
    default_config = {
        'method': 'SURF',
        'prob_smoothing': False,
        'smoothing_kernel_size': 5,
        'min_keypoints': 100,
        'image_H': 512,
        'image_W': 640,
        'takes_pair': False,
        'tile_hw': 16384,               # max HW (lane) tile for the scatter kernel
        'matmul_dtype': jnp.bfloat16,   # one-hot / descriptor MXU operand dtype
        'desc_dtype': jnp.bfloat16,     # dense desc map writeback dtype (lossless)
        'check_unique_keypoints': True,
    }

    def __init__(self, config=None):
        self.config = dict(self.default_config)
        if config:
            self.config.update(config)
        # TODO(synk): cv2 SURF/SIFT/LGHD detectAndCompute (FFT log-Gabor filter
        # bank, FAST corners, per-patch argmax + bincount) has no Pallas
        # equivalent; keypoints/descriptors are passed in as precomputed inputs.
        self.matmul_dtype = np.dtype(self.config['matmul_dtype'])
        self.desc_dtype = np.dtype(self.config['desc_dtype'])
        self.filter_g1d = None
        if self.config['prob_smoothing']:
            ks = self.config['smoothing_kernel_size']
            if ks % 2 == 0:
                raise ValueError('smoothing_kernel_size needs to be uneven')
            self.filter_g1d = get_gaussian_filter_weights_1d(ks)

    def forward(self, data, keypoints_yx, descriptors):
        assert data['image'].shape[0] == 1
        assert len(data['image'].shape) == 4
        _, _, H, W = data['image'].shape
        K = int(keypoints_yx.shape[0])
        # (min_keypoints re-detection with method_2 is detector-side logic and
        #  is skipped — detector output is already supplied.)
        if K > 0:
            kp_np = np.asarray(keypoints_yx).astype(np.int64)
            kp_flat = kp_np[:, 0] * W + kp_np[:, 1]
            assert kp_flat.min() >= 0 and kp_flat.max() < H * W, \
                'keypoint out of image bounds'
            if self.config['check_unique_keypoints']:
                # TODO(synk): the torch loop overwrites duplicate pixels; the
                # one-hot matmul sums descriptors, so require unique pixels.
                assert np.unique(kp_flat).size == K, 'duplicate keypoint pixels'
            prob, desc = scatter_keypoints(
                kp_flat, np.asarray(descriptors, np.float32), H, W,
                tile_hw=self.config['tile_hw'],
                matmul_dtype=self.matmul_dtype,
                desc_dtype=self.desc_dtype)
            if self.filter_g1d is not None:
                prob = smooth_prob(prob, self.filter_g1d)
            prob = prob.astype(data['image'].dtype)     # single cast at the end
        else:
            # Matches the torch module: desc collapses to [1, 1, H, W].
            prob = jnp.zeros_like(data['image'])
            desc = jnp.zeros((1, 1, H, W), jnp.float32)
        return {'prob': prob, 'desc': desc}

    def takes_pair(self):
        return self.config['takes_pair']


# ---------------------------------------------------------------------------
# NumPy reference for sanity checking (mirrors the torch scatter loop).
# ---------------------------------------------------------------------------
def _reference(image, kp_yx, descriptors_eff, g1d):
    _, _, H, W = image.shape
    kp_yx = np.asarray(kp_yx)
    descriptors_eff = np.asarray(descriptors_eff, dtype=np.float32)
    K, D = descriptors_eff.shape
    prob = np.zeros((H, W), np.float32)
    desc = np.zeros((D, H, W), np.float32)
    for i in range(K):
        y, x = int(kp_yx[i, 0]), int(kp_yx[i, 1])
        prob[y, x] = 1.0
        desc[:, y, x] = descriptors_eff[i]
    if g1d is not None:
        ks = len(g1d)
        pad = (ks - 1) // 2
        k2d = np.outer(np.asarray(g1d, np.float64), np.asarray(g1d, np.float64))
        pp = np.pad(prob.astype(np.float64), pad)
        out = np.zeros((H, W), np.float64)
        for di in range(ks):
            for dj in range(ks):
                out += k2d[di, dj] * pp[di:di + H, dj:dj + W]
        prob = out.astype(np.float32)
    return prob.reshape(1, 1, H, W), desc.reshape(1, D, H, W)


if __name__ == "__main__":
    key = jax.random.PRNGKey(0)
    H, W, D, K = 32, 128, 32, 12
    k_img, k_kp, k_desc = jax.random.split(key, 3)

    image = jax.random.uniform(k_img, (1, 1, H, W), dtype=jnp.float32)

    # Simulated detector output: unique keypoints clustered in the top rows
    # (leaves several HW tiles empty -> exercises the empty-tile fast path),
    # plus two keypoints near the bottom of the image.
    perm = jax.random.permutation(k_kp, (H // 4) * W)[:K - 2]
    kp_head = jnp.stack([perm // W, perm % W], axis=1).astype(jnp.int32)
    kp_tail = jnp.array([[H - 1, W - 1], [H - 2, 5]], jnp.int32)
    kp_yx = jnp.concatenate([kp_head, kp_tail], axis=0)
    descriptors = jax.random.normal(k_desc, (K, D), dtype=jnp.float32)

    # tile_hw=512 -> 8 HW tiles at this size (multi-tile + empty-tile paths).
    model = ClassicDetectorsPallas({'prob_smoothing': True, 'tile_hw': 512})
    out = model.forward({'image': image}, kp_yx, descriptors)
    prob = jax.block_until_ready(out['prob'])
    desc = jax.block_until_ready(out['desc'])

    # Reference: round descriptors through the kernel's bf16 operand dtype so
    # the comparison is exact (one-hot 0/1 and single-term sums are exact).
    desc_eff = np.asarray(jnp.asarray(descriptors, dtype=model.matmul_dtype)
                          .astype(jnp.float32))
    kp_np = np.asarray(kp_yx)
    prob_ref, desc_ref = _reference(np.asarray(image), kp_np, desc_eff,
                                    model.filter_g1d)

    assert prob.shape == (1, 1, H, W) and desc.shape == (1, D, H, W)
    np.testing.assert_allclose(np.asarray(prob, dtype=np.float32), prob_ref,
                               rtol=1e-5, atol=1e-5)
    np.testing.assert_allclose(np.asarray(desc, dtype=np.float32), desc_ref,
                               rtol=1e-5, atol=1e-5)

    # Raw (unsmoothed) prob path.
    model_ns = ClassicDetectorsPallas({'prob_smoothing': False, 'tile_hw': 512})
    out_ns = model_ns.forward({'image': image}, kp_yx, descriptors)
    prob_ref_ns, _ = _reference(np.asarray(image), kp_np, desc_eff, None)
    np.testing.assert_allclose(
        np.asarray(jax.block_until_ready(out_ns['prob']), dtype=np.float32),
        prob_ref_ns, rtol=1e-5, atol=1e-5)

    # K == 0 branch (mirrors the torch module: desc is [1, 1, H, W]).
    out0 = model.forward({'image': image},
                         jnp.zeros((0, 2), jnp.int32),
                         jnp.zeros((0, D), jnp.float32))
    assert out0['prob'].shape == (1, 1, H, W)
    assert out0['desc'].shape == (1, 1, H, W)
    jax.block_until_ready(out0['prob'])

    print("KERNEL_OK")
</pallas_src>

<mosaic_0001>
module attributes {stable_mosaic.version = 11 : i64} {
  func.func @_scatter_kernel(%arg0: i32, %arg1: memref<8xi32, #tpu.memory_space<smem>>, %arg2: memref<128x1xi32, #tpu.memory_space<vmem>>, %arg3: memref<1x33x128xbf16, #tpu.memory_space<vmem>>, %arg4: memref<1x512xf32, #tpu.memory_space<vmem>>, %arg5: memref<32x512xbf16, #tpu.memory_space<vmem>>) attributes {dimension_semantics = [#tpu.dimension_semantics<parallel>], iteration_bounds = array<i64: 8>, scalar_prefetch = 1 : i64, scratch_operands = 0 : i64, tpu.core_type = #tpu.core_type<tc>, window_params = [{transform_indices = @transform_0, window_bounds = array<i64: 128, 1>}, {transform_indices = @transform_1, window_bounds = array<i64: 1, 33, 128>}, {transform_indices = @transform_2, window_bounds = array<i64: 1, 512>}, {transform_indices = @transform_3, window_bounds = array<i64: 32, 512>}]} {
    %0 = arith.index_cast %arg0 : i32 to index
    %1 = memref.load %arg1[%0] : memref<8xi32, #tpu.memory_space<smem>>
    %c0_i32 = arith.constant 0 : i32
    %2 = arith.cmpi sgt, %1, %c0_i32 : i32
    %3 = arith.extui %2 : i1 to i32
    %c0_i32_0 = arith.constant 0 : i32
    %4 = arith.cmpi ne, %3, %c0_i32_0 : i32
    scf.if %4 {
      %c512_i32 = arith.constant 512 : i32
      %10 = arith.muli %arg0, %c512_i32 : i32
      %11 = tpu.iota {dimensions = array<i32: 1>} : vector<1x512xi32>
      %12 = vector.broadcast %10 : i32 to vector<1x512xi32>
      %13 = arith.addi %11, %12 : vector<1x512xi32>
      %c0 = arith.constant 0 : index
      %c0_3 = arith.constant 0 : index
      %14 = vector.load %arg2[%c0, %c0_3] : memref<128x1xi32, #tpu.memory_space<vmem>>, vector<128x1xi32>
      %15 = vector.broadcast %13 : vector<1x512xi32> to vector<128x512xi32>
      %16 = vector.broadcast %14 : vector<128x1xi32> to vector<128x512xi32>
      %17 = arith.cmpi eq, %15, %16 : vector<128x512xi32>
      %18 = arith.extui %17 : vector<128x512xi1> to vector<128x512xi32>
      %19 = arith.sitofp %18 : vector<128x512xi32> to vector<128x512xf32>
      %20 = arith.truncf %19 : vector<128x512xf32> to vector<128x512xbf16>
      %c0_4 = arith.constant 0 : index
      %c0_5 = arith.constant 0 : index
      %c0_6 = arith.constant 0 : index
      %21 = vector.load %arg3[%c0_4, %c0_5, %c0_6] : memref<1x33x128xbf16, #tpu.memory_space<vmem>>, vector<1x33x128xbf16>
      %22 = vector.shape_cast %21 : vector<1x33x128xbf16> to vector<33x128xbf16>
      %cst = arith.constant dense<0.000000e+00> : vector<33x512xf32>
      %23 = tpu.matmul %22, %20, %cst {dimension_numbers = #tpu.dot_dimension_numbers<[1], [0], [0], [1], [0, 0, 1, 1], [], []>} : vector<33x128xbf16>, vector<128x512xbf16>, vector<33x512xf32> -> vector<33x512xf32>
      %24 = vector.extract_strided_slice %23 {offsets = [0, 0], sizes = [32, 512], strides = [1, 1]} : vector<33x512xf32> to vector<32x512xf32>
      %25 = arith.truncf %24 : vector<32x512xf32> to vector<32x512xbf16>
      %c0_7 = arith.constant 0 : index
      %c0_8 = arith.constant 0 : index
      %26 = vector.load %arg5[%c0_7, %c0_8] : memref<32x512xbf16, #tpu.memory_space<vmem>>, vector<32x512xbf16>
      tpu.vector_store %arg5[%c0_7, %c0_8], %25 {strides = array<i32>} : memref<32x512xbf16, #tpu.memory_space<vmem>>, vector<32x512xbf16>,
      %27 = vector.extract_strided_slice %23 {offsets = [32, 0], sizes = [1, 512], strides = [1, 1]} : vector<33x512xf32> to vector<1x512xf32>
      %cst_9 = arith.constant 1.000000e+00 : f32
      %28 = vector.broadcast %cst_9 : f32 to vector<1x512xf32>
      %29 = arith.minimumf %27, %28 : vector<1x512xf32>
      %c0_10 = arith.constant 0 : index
      %c0_11 = arith.constant 0 : index
      %30 = vector.load %arg4[%c0_10, %c0_11] : memref<1x512xf32, #tpu.memory_space<vmem>>, vector<1x512xf32>
      tpu.vector_store %arg4[%c0_10, %c0_11], %29 {strides = array<i32>} : memref<1x512xf32, #tpu.memory_space<vmem>>, vector<1x512xf32>,
    } else {
    }
    %5 = arith.index_cast %arg0 : i32 to index
    %6 = memref.load %arg1[%5] : memref<8xi32, #tpu.memory_space<smem>>
    %c0_i32_1 = arith.constant 0 : i32
    %7 = arith.cmpi eq, %6, %c0_i32_1 : i32
    %8 = arith.extui %7 : i1 to i32
    %c0_i32_2 = arith.constant 0 : i32
    %9 = arith.cmpi ne, %8, %c0_i32_2 : i32
    scf.if %9 {
      %cst = arith.constant 0.000000e+00 : f32
      %10 = vector.broadcast %cst : f32 to vector<1x512xf32>
      %c0 = arith.constant 0 : index
      %c0_3 = arith.constant 0 : index
      %11 = vector.load %arg4[%c0, %c0_3] : memref<1x512xf32, #tpu.memory_space<vmem>>, vector<1x512xf32>
      tpu.vector_store %arg4[%c0, %c0_3], %10 {strides = array<i32>} : memref<1x512xf32, #tpu.memory_space<vmem>>, vector<1x512xf32>,
      %cst_4 = arith.constant 0.000000e+00 : bf16
      %12 = vector.broadcast %cst_4 : bf16 to vector<32x512xbf16>
      %c0_5 = arith.constant 0 : index
      %c0_6 = arith.constant 0 : index
      %13 = vector.load %arg5[%c0_5, %c0_6] : memref<32x512xbf16, #tpu.memory_space<vmem>>, vector<32x512xbf16>
      tpu.vector_store %arg5[%c0_5, %c0_6], %12 {strides = array<i32>} : memref<32x512xbf16, #tpu.memory_space<vmem>>, vector<32x512xbf16>,
    } else {
    }
    return
  }
  func.func @transform_0(%arg0: i32, %arg1: memref<8xi32, #tpu.memory_space<smem>>) -> (i32, i32) {
    %c0_i32 = arith.constant 0 : i32
    %c0_i32_0 = arith.constant 0 : i32
    return %arg0, %c0_i32 : i32, i32
  }
  func.func @transform_1(%arg0: i32, %arg1: memref<8xi32, #tpu.memory_space<smem>>) -> (i32, i32, i32) {
    %c0_i32 = arith.constant 0 : i32
    %c0_i32_0 = arith.constant 0 : i32
    %c0_i32_1 = arith.constant 0 : i32
    return %arg0, %c0_i32, %c0_i32_0 : i32, i32, i32
  }
  func.func @transform_2(%arg0: i32, %arg1: memref<8xi32, #tpu.memory_space<smem>>) -> (i32, i32) {
    %c0_i32 = arith.constant 0 : i32
    %c0_i32_0 = arith.constant 0 : i32
    return %c0_i32, %arg0 : i32, i32
  }
  func.func @transform_3(%arg0: i32, %arg1: memref<8xi32, #tpu.memory_space<smem>>) -> (i32, i32) {
    %c0_i32 = arith.constant 0 : i32
    %c0_i32_0 = arith.constant 0 : i32
    return %c0_i32, %arg0 : i32, i32
  }
}

</mosaic_0001>

<bundles_post_ra>
// kernel: tpu_custom_call.1
= control target key start
LH: loop header
LB: loop body
LE: loop exit
PB: predicated region body
PF: predicated region fallthrough
CT: control target
= control target key end

     0   :  { %s1154_s18 = smov [#allocation3]   ;;  %s1465_s0 = inlined_call_operand.vmem [shape: s32[8], index: 0, kind: input, shape index: {}]   ;;  %s1466_s1 = inlined_call_operand.vmem [shape: s32[1024,1], index: 1, kind: input, shape index: {}]   ;;  %s1467_s2 = inlined_call_operand.vmem [shape: bf16[8,33,128], index: 2, kind: input, shape index: {}]   ;;  %s1468_s3 = inlined_call_operand.hbm [shape: f32[1,4096], index: 3, kind: output, shape index: {0}]   ;;  %s1469_s4 = inlined_call_operand.hbm [shape: bf16[32,4096], index: 4, kind: output, shape index: {1}]  }
   0x1   :  { %s11_s17 = sshll.u32 %s1465_s0, 4  ;;  %s12_s17 = int_to_ptr.vmem [resolvable:$true] %s11_s17 }
   0x2   :  { %14 = dma.vmem_to_smem %s12_s17, 16, %s1154_s18, [#allocation2] }
   0x3   :  { %1128 = dma.done.wait [#allocation2], 16 }
   0x4   :  { %1129 = vsyncadd [#allocation2], 4294967280 }
   0x5   :  { %17 = sfence }
   0x6   :  { %18 = vsyncpa [#allocation5], 0 }
   0x7   :  { %20 = vsyncpa [#allocation5 + $0x1], 0 }
   0x8   :  { %21 = vsyncpa [#allocation7], 0 }
   0x9   :  { %23 = vsyncpa [#allocation7 + $0x1], 0  ;;  %s1190_s19 = smov 0   ;;  %s1192_s20 = smov 0  }
   0xa   :  { %s1194_s21 = smov 0   ;;  %s1196_s22 = smov 0  }
   0xb LB: > { %s1211_s0 = sadd.s32 4294967295, %s1152_s22   ;;  %s830_s23 = sadd.s32 4294967294, %s1152_s22   ;;  %s1152_s22 = sphi %s1196_s22, %s1475_s22   ;;  %s1148_s21 = sphi %s1194_s21, %s1474_s21   ;;  %s1144_s20 = sphi %s1192_s20, %s1473_s20   ;;  %s1140_s19 = sphi %s1190_s19, %s1472_s19  }
   0xc   : > { %s1215_s24 = sadd.s32 1, %s1152_s22   ;;  %s88_s25 = sadd.s32 1, %s1148_s21 }
   0xd   : > { %s85_s26 = ssub.s32 %s1152_s22, %s1215_s24  ;;  %p98_p0 = scmp.ne.s32.totalorder %s1148_s21, %s1144_s20 }
   0xe   : > { %p86_p1 = scmp.eq.s32.totalorder %s85_s26, 0  ;;  %p99_p2 = scmp.eq.s32.totalorder %s1211_s0, 7 }
   0xf   : > { %p104_p3 = scmp.ne.s32.totalorder %s1144_s20, %s1140_s19  ;;  %p105_p4 = scmp.eq.s32.totalorder %s830_s23, 7 }
  0x10   : > { %s1226_s27 = scalar_select %p86_p1, %s1148_s21, %s88_s25  }
  0x11   : > { %p1228_p5 = por %p99_p2, %p98_p0  ;;  %p1232_p6 = por %p105_p4, %p104_p3 }
  0x12   : > { %p833_p7 = scmp.ge.s32.totalorder %s1152_s22, 1  ;;  %p166_p8 = scmp.lt.s32.totalorder %s1152_s22, 9 }
  0x14   : > { %p167_p9 = pnand %p833_p7, %p166_p8 }
  0x15   : > { %s1239_s30 = sand.u32 (!%p167_p9), 1, %s1144_s20   ;;  %s1242_s5 = sshll.u32 (!%p167_p9), %s1211_s0, 4 }
  0x16   : > { %170 = sbr.rel (%p167_p9) target bundleno = 430 (0x1ae), region = 28  ;;  %s834_s6 = sshll.u32 (!%p167_p9), %s1239_s30, 2 }
  0x17   : > { %s835_s7 = sshll.u32 (!%p167_p9), %s1239_s30, 6  ;;  %p201_p10 = scmp.lt.s32.totalorder (!%p167_p9), %s1242_s5, 127 }
  0x18   : > { %p206_p11 = scmp.lt.s32.totalorder (!%p167_p9), %s1211_s0, 7  ;;  %s214_s8 = sld [smem:[#allocation3 + %s1211_s0]] (!%p167_p9) }
  0x19   : > { %s1261_s23 = scalar_lea.vmem (!%p167_p9), [#allocation4], %s834_s6  ;;  %s1263_s25 = scalar_lea.vmem (!%p167_p9), [#allocation6], %s835_s7 }
  0x1b   : > { %s202_s9 = scalar_select %p201_p10, %s1242_s5, 127 }
  0x1c   : > { %s207_s10 = scalar_select %p206_p11, %s1211_s0, 7 }
  0x1d   : > { %s837_s11 = sshll.u32 %s202_s9, 3 }
  0x1e   : > { %s1254_s14 = scalar_lea.vmem %s1466_s1, %s837_s11  ;;  %s988_s15 = smul.u32 20, %s207_s10 }
  0x1f   : > { %p839_p12 = scmp.le.s32.totalorder %s214_s8, 0 }
  0x20   : > { %s1259_s18 = scalar_lea.vmem %s1467_s2, %s988_s15  ;;  %s840_s26 = sshll.u32 (!%p839_p12), %s1211_s0, 9 }
  0x21   : > { %218 = sbr.rel (%p839_p12) target bundleno = 376 (0x178), region = 32 }
  0x26   : > { %v244_v0 = vld [vmem:[%s1254_s14 + $0x70] sm:$0xff]  ;;  %v242_v1 = vld [vmem:[%s1254_s14 + $0x60] sm:$0xff]  ;;  %v1155_v3 = vmov 0   ;;  %v243_v4 = vld [vmem:[%s1254_s14 + $0x68] sm:$0xff]  ;;  %v220_v17 = vlaneseq  ;;  %v225_v22 = vstv %s840_s26  ;;  %v1156_v33 = vmov 1.0|1.0  }
  0x27   : > { %v240_v2 = vld [vmem:[%s1254_s14 + $0x50] sm:$0xff]  ;;  %1043 = vset.pattern.permute.xlu2 %v1155_v3  ;;  %1042 = vset.pattern.permute.xlu1 %v1155_v3  ;;  %v245_v5 = vld [vmem:[%s1254_s14 + $0x78] sm:$0xff]  ;;  %v239_v7 = vld [vmem:[%s1254_s14 + $0x48] sm:$0xff] }
  0x28   : > { %1041 = vset.pattern.permute.xlu0 %v1155_v3  ;;  %283 = vperm.xlu1 %1042, %v242_v1   ;;  %v241_v6 = vld [vmem:[%s1254_s14 + $0x58] sm:$0xff]  ;;  %v238_v8 = vld [vmem:[%s1254_s14 + $0x40] sm:$0xff]  ;;  %v236_v9 = vld [vmem:[%s1254_s14 + $0x30] sm:$0xff]  ;;  %v221_v19 = vand.u32 127, %v220_v17 }
  0x29   : > { %289 = vperm.xlu0 %1041, %v244_v0   ;;  %277 = vperm.xlu2 %1043, %v240_v2   ;;  %v234_v10 = vld [vmem:[%s1254_s14 + $0x20] sm:$0xff]  ;;  %v237_v11 = vld [vmem:[%s1254_s14 + $0x38] sm:$0xff]  ;;  %v235_v12 = vld [vmem:[%s1254_s14 + $0x28] sm:$0xff] }
  0x2a   : > { %v233_v13 = vld [vmem:[%s1254_s14 + $0x18] sm:$0xff]  ;;  %v232_v14 = vld [vmem:[%s1254_s14 + $0x10] sm:$0xff]  ;;  %v230_v15 = vld [vmem:[%s1254_s14] sm:$0xff]  ;;  %v222_v23 = vadd.s32 128, %v221_v19  ;;  %v223_v24 = vadd.s32 256, %v221_v19  ;;  %v224_v25 = vadd.s32 384, %v221_v19  ;;  %v1285_v26 = vadd.s32 %v225_v22, %v221_v19 }
  0x2b   : > { %v231_v16 = vld [vmem:[%s1254_s14 + $0x8] sm:$0xff]  ;;  %v985_v44 = vld [vmem:[%s1259_s18] sm:$0xff]  ;;  %v522_v46 = vld [vmem:[%s1259_s18 + $0x10] sm:$0x1] }
  0x2c   : > { %v1287_v27 = vadd.s32 %v225_v22, %v222_v23  ;;  %v1289_v29 = vadd.s32 %v225_v22, %v223_v24  ;;  %v1291_v32 = vadd.s32 %v225_v22, %v224_v25  ;;  %v986_v45 = vld [vmem:[%s1259_s18 + $0x8] sm:$0xff]  ;;  %v532_v47 = vunpack.c.l.b16 %v522_v46 }
  0x2e   : > { %v535_v48 = vpack.c.b16 %v532_v47, %v532_v47 }
  0x30   : > { %286 = vperm.xlu1 %1042, %v243_v4  }
  0x31   : > { %292 = vperm.xlu0 %1041, %v245_v5   ;;  %280 = vperm.xlu2 %1043, %v241_v6  }
  0x38   : > { %274 = vperm.xlu1 %1042, %v239_v7  }
  0x39   : > { %271 = vperm.xlu0 %1041, %v238_v8   ;;  %265 = vperm.xlu2 %1043, %v236_v9  }
  0x40   : > { %259 = vperm.xlu1 %1042, %v234_v10  }
  0x41   : > { %268 = vperm.xlu0 %1041, %v237_v11   ;;  %262 = vperm.xlu2 %1043, %v235_v12  }
  0x48   : > { %256 = vperm.xlu1 %1042, %v233_v13  }
  0x49   : > { %253 = vperm.xlu0 %1041, %v232_v14   ;;  %247 = vperm.xlu2 %1043, %v230_v15  }
  0x51   : > { %250 = vperm.xlu0 %1041, %v231_v16  }
  0x83   : > { %v1281_v18 = vpop.permute.xlu2 %277 }
  0x8b   : > { %v281_v30 = vpop.permute.xlu2 %280 }
  0x93   : > { %v266_v36 = vpop.permute.xlu2 %265 }
  0x9a   : > { %v284_v20 = vpop.permute.xlu1 %283 }
  0x9b   : > { %v290_v21 = vpop.permute.xlu0 %289  ;;  %vm342_vm14 = vcmp.eq.s32.totalorder %v1285_v26, %v284_v20  ;;  %v263_v39 = vpop.permute.xlu2 %262 }
  0x9c   : > { %vm350_vm0 = vcmp.eq.s32.totalorder %v1285_v26, %v290_v21  ;;  %vm351_vm5 = vcmp.eq.s32.totalorder %v1287_v27, %v290_v21  ;;  %vm352_vm8 = vcmp.eq.s32.totalorder %v1289_v29, %v290_v21  ;;  %vm353_vm11 = vcmp.eq.s32.totalorder %v1291_v32, %v290_v21 }
  0xa2   : > { %v287_v28 = vpop.permute.xlu1 %286 }
  0xa3   : > { %v293_v31 = vpop.permute.xlu0 %292  ;;  %vm346_vm9 = vcmp.eq.s32.totalorder %v1285_v26, %v287_v28  ;;  %vm347_vm12 = vcmp.eq.s32.totalorder %v1287_v27, %v287_v28  ;;  %vm348_vm15 = vcmp.eq.s32.totalorder %v1289_v29, %v287_v28  ;;  %v248_v42 = vpop.permute.xlu2 %247 }
  0xa4   : > { %vm354_vm1 = vcmp.eq.s32.totalorder %v1285_v26, %v293_v31  ;;  %vm355_vm2 = vcmp.eq.s32.totalorder %v1287_v27, %v293_v31  ;;  %vm356_vm3 = vcmp.eq.s32.totalorder %v1289_v29, %v293_v31  ;;  %vm357_vm6 = vcmp.eq.s32.totalorder %v1291_v32, %v293_v31 }
  0xa5   : > { %vm913_vm4 = vmpackc.low %vm354_vm1, %vm350_vm0  ;;  %vm343_vm1 = vcmp.eq.s32.totalorder %v1287_v27, %v284_v20 }
  0xa6   : > { %914 = vmatpush.bf16.msk.msra.mxu0 %vm913_vm4, %v1156_v33  ;;  %vm929_vm7 = vmpackc.low %vm355_vm2, %vm351_vm5  ;;  %vm349_vm2 = vcmp.eq.s32.totalorder %v1291_v32, %v287_v28  ;;  %vm344_vm4 = vcmp.eq.s32.totalorder %v1289_v29, %v284_v20  ;;  %vm334_vm5 = vcmp.eq.s32.totalorder %v1285_v26, %v1281_v18 }
  0xa7   : > { %930 = vmatpush.bf16.msk.msra.mxu1 %vm929_vm7, %v1156_v33  ;;  %vm945_vm10 = vmpackc.low %vm356_vm3, %vm352_vm8  ;;  %vm345_vm8 = vcmp.eq.s32.totalorder %v1291_v32, %v284_v20 }
  0xa8   : > { %946 = vmatpush.bf16.msk.msra.mxu2 %vm945_vm10, %v1156_v33  ;;  %vm961_vm13 = vmpackc.low %vm357_vm6, %vm353_vm11  ;;  %vm338_vm6 = vcmp.eq.s32.totalorder %v1285_v26, %v281_v30  ;;  %vm339_vm10 = vcmp.eq.s32.totalorder %v1287_v27, %v281_v30 }
  0xa9   : > { %962 = vmatpush.bf16.msk.msra.mxu3 %vm961_vm13, %v1156_v33  ;;  %vm915_vm0 = vmpackc.low %vm346_vm9, %vm342_vm14  ;;  %vm335_vm9 = vcmp.eq.s32.totalorder %v1287_v27, %v1281_v18  ;;  %vm340_vm13 = vcmp.eq.s32.totalorder %v1289_v29, %v281_v30 }
  0xaa   : > { %916 = vmatpush.bf16.msk.msra.mxu0 %vm915_vm0, %v1156_v33  ;;  %vm931_vm3 = vmpackc.low %vm347_vm12, %vm343_vm1  ;;  %v275_v34 = vpop.permute.xlu1 %274  ;;  %vm336_vm12 = vcmp.eq.s32.totalorder %v1289_v29, %v1281_v18  ;;  %vm341_vm0 = vcmp.eq.s32.totalorder %v1291_v32, %v281_v30 }
  0xab   : > { %932 = vmatpush.bf16.msk.msra.mxu1 %vm931_vm3, %v1156_v33  ;;  %vm947_vm7 = vmpackc.low %vm348_vm15, %vm344_vm4  ;;  %v272_v35 = vpop.permute.xlu0 %271  ;;  %vm337_vm15 = vcmp.eq.s32.totalorder %v1291_v32, %v1281_v18 }
  0xac   : > { %948 = vmatpush.bf16.msk.msra.mxu2 %vm947_vm7, %v1156_v33  ;;  %vm963_vm11 = vmpackc.low %vm349_vm2, %vm345_vm8  ;;  %vm326_vm3 = vcmp.eq.s32.totalorder %v1285_v26, %v272_v35  ;;  %vm330_vm2 = vcmp.eq.s32.totalorder %v1285_v26, %v275_v34  ;;  %vm327_vm7 = vcmp.eq.s32.totalorder %v1287_v27, %v272_v35  ;;  %vm331_vm8 = vcmp.eq.s32.totalorder %v1287_v27, %v275_v34 }
  0xad   : > { %964 = vmatpush.bf16.msk.msra.mxu3 %vm963_vm11, %v1156_v33  ;;  %vm917_vm14 = vmpackc.low %vm338_vm6, %vm334_vm5  ;;  %vm328_vm6 = vcmp.eq.s32.totalorder %v1289_v29, %v272_v35  ;;  %vm332_vm11 = vcmp.eq.s32.totalorder %v1289_v29, %v275_v34 }
  0xae   : > { %918 = vmatpush.bf16.msk.msra.mxu0 %vm917_vm14, %v1156_v33  ;;  %vm933_vm1 = vmpackc.low %vm339_vm10, %vm335_vm9  ;;  %vm329_vm10 = vcmp.eq.s32.totalorder %v1291_v32, %v272_v35  ;;  %vm333_vm14 = vcmp.eq.s32.totalorder %v1291_v32, %v275_v34 }
  0xaf   : > { %934 = vmatpush.bf16.msk.msra.mxu1 %vm933_vm1, %v1156_v33  ;;  %vm949_vm4 = vmpackc.low %vm340_vm13, %vm336_vm12 }
  0xb0   : > { %950 = vmatpush.bf16.msk.msra.mxu2 %vm949_vm4, %v1156_v33  ;;  %vm965_vm5 = vmpackc.low %vm341_vm0, %vm337_vm15  ;;  %vm318_vm0 = vcmp.eq.s32.totalorder %v1285_v26, %v266_v36 }
  0xb1   : > { %966 = vmatpush.bf16.msk.msra.mxu3 %vm965_vm5, %v1156_v33  ;;  %vm919_vm9 = vmpackc.low %vm330_vm2, %vm326_vm3 }
  0xb2   : > { %920 = vmatpush.bf16.msk.msra.mxu0 %vm919_vm9, %v1156_v33  ;;  %vm935_vm12 = vmpackc.low %vm331_vm8, %vm327_vm7  ;;  %v260_v37 = vpop.permute.xlu1 %259  ;;  %vm319_vm7 = vcmp.eq.s32.totalorder %v1287_v27, %v266_v36 }
  0xb3   : > { %936 = vmatpush.bf16.msk.msra.mxu1 %vm935_vm12, %v1156_v33  ;;  %vm951_vm13 = vmpackc.low %vm332_vm11, %vm328_vm6  ;;  %v269_v38 = vpop.permute.xlu0 %268  ;;  %vm320_vm6 = vcmp.eq.s32.totalorder %v1289_v29, %v266_v36  ;;  %vm310_vm11 = vcmp.eq.s32.totalorder %v1285_v26, %v260_v37 }
  0xb4   : > { %952 = vmatpush.bf16.msk.msra.mxu2 %vm951_vm13, %v1156_v33  ;;  %vm967_vm15 = vmpackc.low %vm333_vm14, %vm329_vm10  ;;  %vm322_vm1 = vcmp.eq.s32.totalorder %v1285_v26, %v269_v38  ;;  %vm323_vm3 = vcmp.eq.s32.totalorder %v1287_v27, %v269_v38  ;;  %vm324_vm2 = vcmp.eq.s32.totalorder %v1289_v29, %v269_v38  ;;  %vm325_vm8 = vcmp.eq.s32.totalorder %v1291_v32, %v269_v38 }
  0xb5   : > { %968 = vmatpush.bf16.msk.msra.mxu3 %vm967_vm15, %v1156_v33  ;;  %vm921_vm4 = vmpackc.low %vm322_vm1, %vm318_vm0  ;;  %vm321_vm10 = vcmp.eq.s32.totalorder %v1291_v32, %v266_v36  ;;  %vm311_vm14 = vcmp.eq.s32.totalorder %v1287_v27, %v260_v37  ;;  %vm314_vm13 = vcmp.eq.s32.totalorder %v1285_v26, %v263_v39  ;;  %vm312_vm15 = vcmp.eq.s32.totalorder %v1289_v29, %v260_v37 }
  0xb6   : > { %922 = vmatpush.bf16.msk.msra.mxu0 %vm921_vm4, %v1156_v33  ;;  %vm937_vm5 = vmpackc.low %vm323_vm3, %vm319_vm7  ;;  %vm315_vm1 = vcmp.eq.s32.totalorder %v1287_v27, %v263_v39  ;;  %vm313_vm3 = vcmp.eq.s32.totalorder %v1291_v32, %v260_v37  ;;  %vm316_vm4 = vcmp.eq.s32.totalorder %v1289_v29, %v263_v39 }
  0xb7   : > { %938 = vmatpush.bf16.msk.msra.mxu1 %vm937_vm5, %v1156_v33  ;;  %vm953_vm9 = vmpackc.low %vm324_vm2, %vm320_vm6 }
  0xb8   : > { %954 = vmatpush.bf16.msk.msra.mxu2 %vm953_vm9, %v1156_v33  ;;  %vm969_vm12 = vmpackc.low %vm325_vm8, %vm321_vm10  ;;  %vm317_vm8 = vcmp.eq.s32.totalorder %v1291_v32, %v263_v39 }
  0xb9   : > { %970 = vmatpush.bf16.msk.msra.mxu3 %vm969_vm12, %v1156_v33  ;;  %vm923_vm0 = vmpackc.low %vm314_vm13, %vm310_vm11 }
  0xba   : > { %924 = vmatpush.bf16.msk.msra.mxu0 %vm923_vm0, %v1156_v33  ;;  %vm939_vm2 = vmpackc.low %vm315_vm1, %vm311_vm14  ;;  %v257_v40 = vpop.permute.xlu1 %256 }
  0xbb   : > { %940 = vmatpush.bf16.msk.msra.mxu1 %vm939_vm2, %v1156_v33  ;;  %vm955_vm7 = vmpackc.low %vm316_vm4, %vm312_vm15  ;;  %v254_v41 = vpop.permute.xlu0 %253  ;;  %vm306_vm5 = vcmp.eq.s32.totalorder %v1285_v26, %v257_v40  ;;  %vm307_vm6 = vcmp.eq.s32.totalorder %v1287_v27, %v257_v40  ;;  %vm308_vm12 = vcmp.eq.s32.totalorder %v1289_v29, %v257_v40  ;;  %vm309_vm0 = vcmp.eq.s32.totalorder %v1291_v32, %v257_v40 }
  0xbc   : > { %956 = vmatpush.bf16.msk.msra.mxu2 %vm955_vm7, %v1156_v33  ;;  %vm971_vm11 = vmpackc.low %vm317_vm8, %vm313_vm3  ;;  %vm302_vm9 = vcmp.eq.s32.totalorder %v1285_v26, %v254_v41  ;;  %vm303_vm10 = vcmp.eq.s32.totalorder %v1287_v27, %v254_v41  ;;  %vm304_vm14 = vcmp.eq.s32.totalorder %v1289_v29, %v254_v41  ;;  %vm305_vm15 = vcmp.eq.s32.totalorder %v1291_v32, %v254_v41 }
  0xbd   : > { %972 = vmatpush.bf16.msk.msra.mxu3 %vm971_vm11, %v1156_v33  ;;  %vm925_vm13 = vmpackc.low %vm306_vm5, %vm302_vm9  ;;  %vm294_vm4 = vcmp.eq.s32.totalorder %v1285_v26, %v248_v42 }
  0xbe   : > { %926 = vmatpush.bf16.msk.msra.mxu0 %vm925_vm13, %v1156_v33  ;;  %vm941_vm1 = vmpackc.low %vm307_vm6, %vm303_vm10  ;;  %vm295_vm6 = vcmp.eq.s32.totalorder %v1287_v27, %v248_v42  ;;  %vm297_vm13 = vcmp.eq.s32.totalorder %v1291_v32, %v248_v42 }
  0xbf   : > { %942 = vmatpush.bf16.msk.msra.mxu1 %vm941_vm1, %v1156_v33  ;;  %vm957_vm3 = vmpackc.low %vm308_vm12, %vm304_vm14  ;;  %vm296_vm14 = vcmp.eq.s32.totalorder %v1289_v29, %v248_v42  ;;  %vm660_vm1 = vcmask 1042434  }
  0xc0   : > { %958 = vmatpush.bf16.msk.msra.mxu2 %vm957_vm3, %v1156_v33  ;;  %vm973_vm2 = vmpackc.low %vm309_vm0, %vm305_vm15  ;;  %vm658_vm0 = vcmask 1040384   ;;  %vm662_vm3 = vcmask 1041408  }
  0xc1   : > { %974 = vmatpush.bf16.msk.msra.mxu3 %vm973_vm2, %v1156_v33  ;;  %vm667_vm2 = vcmp.lt.s32.totalorder %v220_v17, 512 }
  0xc3   : > { %v251_v43 = vpop.permute.xlu0 %250 }
  0xc4   : > { %vm298_vm7 = vcmp.eq.s32.totalorder %v1285_v26, %v251_v43  ;;  %vm299_vm8 = vcmp.eq.s32.totalorder %v1287_v27, %v251_v43  ;;  %vm300_vm5 = vcmp.eq.s32.totalorder %v1289_v29, %v251_v43  ;;  %vm301_vm9 = vcmp.eq.s32.totalorder %v1291_v32, %v251_v43 }
  0xc5   : > { %vm927_vm11 = vmpackc.low %vm298_vm7, %vm294_vm4 }
  0xc6   : > { %928 = vmatpush.bf16.msk.msra.mxu0 %vm927_vm11, %v1156_v33  ;;  %vm943_vm10 = vmpackc.low %vm299_vm8, %vm295_vm6 }
  0xc7   : > { %944 = vmatpush.bf16.msk.msra.mxu1 %vm943_vm10, %v1156_v33  ;;  %vm959_vm12 = vmpackc.low %vm300_vm5, %vm296_vm14 }
  0xc8   : > { %960 = vmatpush.bf16.msk.msra.mxu2 %vm959_vm12, %v1156_v33  ;;  %vm975_vm15 = vmpackc.low %vm301_vm9, %vm297_vm13 }
  0xc9   : > { %976 = vmatpush.bf16.msk.msra.mxu3 %vm975_vm15, %v1156_v33  ;;  %547 = vmatmul.bf16.vlgmr.msra.gmra.mxu0 %v985_v44 }
  0xca   : > { %570 = vmatmul.bf16.vlgmr.msra.gmra.mxu1 %v985_v44 }
  0xcb   : > { %593 = vmatmul.bf16.vlgmr.msra.gmra.mxu2 %v985_v44 }
  0xcc   : > { %616 = vmatmul.bf16.vlgmr.msra.gmra.mxu3 %v985_v44 }
  0xd9   : > { %552 = vmatmul.bf16.gmra.mxu0 %v986_v45 }
  0xda   : > { %575 = vmatmul.bf16.gmra.mxu1 %v986_v45 }
  0xdb   : > { %598 = vmatmul.bf16.gmra.mxu2 %v986_v45 }
  0xdc   : > { %621 = vmatmul.bf16.gmra.mxu3 %v986_v45 }
  0xe9   : > { %557 = vmatmul.bf16.gmra.mxu0 %v535_v48 }
  0xea   : > { %580 = vmatmul.bf16.gmra.mxu1 %v535_v48 }
  0xeb   : > { %603 = vmatmul.bf16.gmra.mxu2 %v535_v48 }
  0xec   : > { %626 = vmatmul.bf16.gmra.mxu3 %v535_v48 }
 0x146   : > { %v548_v49 = vpop.f32.mrf.mxu0 }
 0x147   : > { %v571_v50 = vpop.f32.mrf.mxu1 }
 0x148   : > { %v631_v51 = vpack.c.bf16 %v571_v50, %v548_v49 }
 0x14a   : > { %639 = vst [vmem:[%s1263_s25] sm:$0xff] %v631_v51 }
 0x14e   : > { %v594_v52 = vpop.f32.mrf.mxu2  ;;  %v550_v53 = vpop.f32.mrf.mxu0 }
 0x14f   : > { %v617_v54 = vpop.f32.mrf.mxu3  ;;  %v573_v55 = vpop.f32.mrf.mxu1 }
 0x150   : > { %v632_v56 = vpack.c.bf16 %v617_v54, %v594_v52  ;;  %v633_v57 = vpack.c.bf16 %v573_v55, %v550_v53 }
 0x152   : > { %640 = vst [vmem:[%s1263_s25 + $0x8] sm:$0xff] %v632_v56 }
 0x153   : > { %641 = vst [vmem:[%s1263_s25 + $0x10] sm:$0xff] %v633_v57 }
 0x156   : > { %v596_v58 = vpop.f32.mrf.mxu2  ;;  %v553_v59 = vpop.f32.mrf.mxu0 }
 0x157   : > { %v619_v60 = vpop.f32.mrf.mxu3  ;;  %v576_v61 = vpop.f32.mrf.mxu1 }
 0x158   : > { %v634_v62 = vpack.c.bf16 %v619_v60, %v596_v58  ;;  %v635_v63 = vpack.c.bf16 %v576_v61, %v553_v59 }
 0x15a   : > { %642 = vst [vmem:[%s1263_s25 + $0x18] sm:$0xff] %v634_v62 }
 0x15b   : > { %643 = vst [vmem:[%s1263_s25 + $0x20] sm:$0xff] %v635_v63 }
 0x15e   : > { %v599_v0 = vpop.f32.mrf.mxu2  ;;  %v555_v1 = vpop.f32.mrf.mxu0 }
 0x15f   : > { %v622_v2 = vpop.f32.mrf.mxu3  ;;  %v578_v3 = vpop.f32.mrf.mxu1 }
 0x160   : > { %v636_v4 = vpack.c.bf16 %v622_v2, %v599_v0  ;;  %v637_v5 = vpack.c.bf16 %v578_v3, %v555_v1 }
 0x162   : > { %644 = vst [vmem:[%s1263_s25 + $0x28] sm:$0xff] %v636_v4 }
 0x163   : > { %645 = vst [vmem:[%s1263_s25 + $0x30] sm:$0xff] %v637_v5 }
 0x166   : > { %v601_v6 = vpop.f32.mrf.mxu2  ;;  %v558_v7 = vpop.f32.mrf.mxu0 }
 0x167   : > { %v624_v8 = vpop.f32.mrf.mxu3  ;;  %v581_v9 = vpop.f32.mrf.mxu1  ;;  %v647_v18 = vmin.f32 %v558_v7, 1.0 }
 0x168   : > { %v638_v10 = vpack.c.bf16 %v624_v8, %v601_v6  ;;  %v648_v11 = vmin.f32 %v581_v9, 1.0 }
 0x16a   : > { %646 = vst [vmem:[%s1263_s25 + $0x38] sm:$0xff] %v638_v10  ;;  %v655_v19 = vrot.slane %v648_v11, 7 }
 0x16c   : > { %v659_v23 = vsel %vm658_vm0, %v647_v18, %v655_v19 }
 0x16e   : > { %v604_v12 = vpop.f32.mrf.mxu2  ;;  %v560_v13 = vpop.f32.mrf.mxu0 }
 0x16f   : > { %v649_v14 = vmin.f32 %v604_v12, 1.0  ;;  %v627_v15 = vpop.f32.mrf.mxu3  ;;  %v583_v16 = vpop.f32.mrf.mxu1 }
 0x170   : > { %v650_v20 = vmin.f32 %v627_v15, 1.0 }
 0x171   : > { %v656_v21 = vrot.slane %v649_v14, 6 }
 0x172   : > { %v657_v22 = vrot.slane %v650_v20, 5 }
 0x174   : > { %v661_v24 = vsel %vm660_vm1, %v656_v21, %v657_v22 }
 0x175   : > { %v663_v25 = vsel %vm662_vm3, %v659_v23, %v661_v24 }
 0x176   : > { %669 = vst.msk [vmem:[%s1261_s23] sm:$0xf] %vm667_vm2, %v663_v25  ;;  %v606_v26 = vpop.f32.mrf.mxu2 }
 0x177   : > { %v629_v27 = vpop.f32.mrf.mxu3 }
 0x178 PF: > { %s670_s6 = sld [smem:[#allocation3 + %s1211_s0]] }
 0x17e   : > { %p977_p13 = scmp.ne.s32.totalorder %s670_s6, 0 }
 0x180   : > { %674 = sbr.rel (%p977_p13) target bundleno = 399 (0x18f), region = 36 }
 0x185   : > { %v675_v28 = vlaneseq  ;;  %v1157_v17 = vmov 0   ;;  %v1158_v29 = vmov 0.0  }
 0x186   : > { %680 = vst [vmem:[%s1263_s25] sm:$0xff] %v1157_v17 }
 0x187   : > { %vm677_vm4 = vcmp.lt.s32.totalorder %v675_v28, 512  ;;  %681 = vst [vmem:[%s1263_s25 + $0x8] sm:$0xff] %v1157_v17 }
 0x188   : > { %679 = vst.msk [vmem:[%s1261_s23] sm:$0xf] %vm677_vm4, %v1158_v29 }
 0x189   : > { %682 = vst [vmem:[%s1263_s25 + $0x10] sm:$0xff] %v1157_v17 }
 0x18a   : > { %683 = vst [vmem:[%s1263_s25 + $0x18] sm:$0xff] %v1157_v17 }
 0x18b   : > { %684 = vst [vmem:[%s1263_s25 + $0x20] sm:$0xff] %v1157_v17 }
 0x18c   : > { %685 = vst [vmem:[%s1263_s25 + $0x28] sm:$0xff] %v1157_v17 }
 0x18d   : > { %686 = vst [vmem:[%s1263_s25 + $0x30] sm:$0xff] %v1157_v17 }
 0x18e   : > { %687 = vst [vmem:[%s1263_s25 + $0x38] sm:$0xff] %v1157_v17 }
 0x18f PF: > { %s980_s7 = sshll.u32 %s1211_s0, 2  ;;  %s706_s11 = sshll.u32 %s1261_s23, 4  ;;  %s707_s11 = int_to_ptr.vmem [resolvable:$true] %s706_s11 }
 0x190   : > { %s704_s10 = scalar_lea.hbm %s1468_s3, %s980_s7  ;;  %s689_s13 = scalar_lea.sflag [#allocation5], %s1239_s30 }
 0x191   : > { %s708_s12 = sshll.u32 %s704_s10, 4  ;;  %s1076_s0 = scalar_lea.hbm %s1468_s3, 32  ;;  %s709_s12 = int_to_ptr.hbm [resolvable:$true] %s708_s12 }
 0x192   : > { %s1070_s14 = sshra.s32 %s709_s12, 4  ;;  %s1071_s14 = int_to_ptr.hbm [resolvable:$true] %s1070_s14 }
 0x193   : > { %s1072_s15 = scalar_lea.hbm %s1071_s14, 4  ;;  %p1077_p3 = scmp.lt.s32.totalorder %s1071_s14, %s1468_s3 }
 0x194   : > { %p1073_p0 = scmp.ne.s32.totalorder %s1071_s14, %s1072_s15  ;;  %p1078_p4 = scmp.lt.s32.totalorder %s1076_s0, %s1072_s15 }
 0x196   : > { %p1074_p1 = pnand %p1073_p0, %p1228_p5  ;;  %p1079_p7 = por %p1078_p4, %p1077_p3 }
 0x198   : > { %p1075_p2 = pneg %p1074_p1 }
 0x19a   : > { %p1080_p8 = pnand %p1079_p7, %p1075_p2 }
 0x19c   : > { %1083 = shalt.err (!%p1080_p8)
}
 0x19d   : > { %989 = dma.vmem_to_hbm [thread:$0]  (%p1228_p5), %s707_s11, 64, %s709_s12, %s689_s13  }
 0x19e   : > { %s719_s7 = scalar_lea.hbm %s1469_s4, %s1242_s5  ;;  %s720_s8 = sshll.u32 %s1263_s25, 4  ;;  %s721_s8 = int_to_ptr.vmem [resolvable:$true] %s720_s8 }
 0x19f   : > { %s722_s9 = sshll.u32 %s719_s7, 4  ;;  %s694_s10 = scalar_lea.sflag [#allocation7], %s1239_s30  ;;  %s723_s9 = int_to_ptr.hbm [resolvable:$true] %s722_s9 }
 0x1a0   : > { %s1098_s14 = sshra.s32 %s723_s9, 4  ;;  %s1104_s11 = scalar_lea.hbm %s1469_s4, 512  ;;  %s1099_s14 = int_to_ptr.hbm [resolvable:$true] %s1098_s14 }
 0x1a1   : > { %s1100_s15 = scalar_lea.hbm %s1099_s14, 64  ;;  %p1105_p12 = scmp.lt.s32.totalorder %s1099_s14, %s1469_s4 }
 0x1a2   : > { %p1101_p9 = scmp.ne.s32.totalorder %s1099_s14, %s1100_s15  ;;  %p1106_p13 = scmp.lt.s32.totalorder %s1104_s11, %s1100_s15 }
 0x1a4   : > { %p1102_p10 = pnand %p1101_p9, %p1228_p5  ;;  %p1107_p0 = por %p1106_p13, %p1105_p12 }
 0x1a6   : > { %p1103_p11 = pneg %p1102_p10 }
 0x1a8   : > { %p1108_p1 = pnand %p1107_p0, %p1103_p11 }
 0x1aa   : > { %1111 = shalt.err (!%p1108_p1)
}
 0x1ab   : > { %s1159_s30 = smov 256   ;;  %s1160_s5 = smov 2048  }
 0x1ac   : > { %s1161_s25 = smov 16  }
 0x1ad   : > { %990 = dma.vmem_to_hbm [thread:$0]  (%p1228_p5), %s721_s8, 1024, %s723_s9, %s694_s10, %s1159_s30, %s1160_s5, %s1161_s25  }
 0x1ae PF: > { %p1000_p2 = scmp.ge.s32.totalorder %s1152_s22, 2  ;;  %s737_s0 = sand.u32 1, %s1140_s19  }
 0x1af   : > { %s738_s18 = scalar_lea.sflag [#allocation5], %s737_s0 }
 0x1b0   : > { %p994_p3 = pnand %p1000_p2, %p1232_p6 }
 0x1b2   : > { %p995_p4 = pneg %p994_p3 }
 0x1b4   : > { %1131 = dma.done.wait (%p995_p4), %s738_s18, 64  }
 0x1b5   : > { %1133 = vsyncadd (%p995_p4), %s738_s18, 4294967232  ;;  %s748_s26 = scalar_lea.sflag [#allocation7], %s737_s0 }
 0x1b6   : > { %1135 = dma.done.wait (%p995_p4), %s748_s26, 1024  }
 0x1b7   : > { %1137 = vsyncadd (%p995_p4), %s748_s26, 4294966272  ;;  %p26_p5 = scmp.ge.s32.totalorder %s1215_s24, 10   ;;  %s1472_s19 = smov %s1144_s20 }
 0x1b8   : > { %s1473_s20 = smov %s1148_s21  ;;  %s1474_s21 = smov %s1226_s27 }
 0x1b9   : > { %s1475_s22 = smov %s1215_s24  ;;  %28 = sbr.rel (!%p26_p5) target bundleno = 11 (0xb), region = 91 }
 0x1be   :  { %754 = vsyncpa [#allocation5], 1 }
 0x1bf   :  { %756 = vsyncpa [#allocation5 + $0x1], 1 }
 0x1c0   :  { %757 = vsyncpa [#allocation7], 1 }
 0x1c1   :  { %759 = vsyncpa [#allocation7 + $0x1], 1 }

</bundles_post_ra>
